<compile_context>
chip_gen: v7x
topology: tpu7x:2x2x1
jax: 0.10.0
libtpu: 0.0.40
codegen_flags: <defaults>
</compile_context>

<pallas_src>
import functools

import jax
import jax.numpy as jnp
from jax import lax
from jax.experimental import pallas as pl
from jax.experimental.pallas import tpu as pltpu

NUM_GROUPS = 32
EPS = 1e-3


def _basic_fc_gn_kernel(x_ref, w_ref, reduce_ref, bcast_ref, params_ref,
                        out_ref, acc_ref, *, inv_group_size):
    # x_ref:      (TM, TK)  caller dtype (f32 or bf16)
    # w_ref:      (TK, C)   bf16
    # reduce_ref: (C, G)    bf16 one-hot group-reduce matrix
    # bcast_ref:  (G, C)    bf16 one-hot group-broadcast matrix
    # params_ref: (8, C)    f32   rows 0/1/2 = bias / gamma / beta
    # out_ref:    (TM, C)   out dtype
    # acc_ref:    (TM, C)   f32 scratch accumulator (persists across the K axis)
    k = pl.program_id(1)

    @pl.when(k == 0)
    def _():
        acc_ref[...] = jnp.zeros_like(acc_ref)

    # Linear partial product: bf16 MXU operands, f32 accumulation.
    x = x_ref[...]
    if x.dtype != jnp.bfloat16:
        x = x.astype(jnp.bfloat16)
    acc_ref[...] += jnp.dot(x, w_ref[...], preferred_element_type=jnp.float32)

    @pl.when(k == pl.num_programs(1) - 1)
    def _():
        params = params_ref[...]
        b = params[0:1, :]
        gamma = params[1:2, :]
        beta = params[2:3, :]

        y = acc_ref[...] + b                                     # (TM, C) f32

        reduce_m = reduce_ref[...]                               # (C, G) bf16
        bcast_m = bcast_ref[...]                                 # (G, C) bf16

        # Group mean: bf16 reduce to (TM, G), scale in f32, bf16 broadcast to (TM, C).
        sum_g = jnp.dot(y.astype(jnp.bfloat16), reduce_m,
                        preferred_element_type=jnp.float32)      # (TM, G)
        mean_g = sum_g * inv_group_size
        mean_c = jnp.dot(mean_g.astype(jnp.bfloat16), bcast_m,
                         preferred_element_type=jnp.float32)     # (TM, C)

        # Two-pass variance (robust to the approximate centering above).
        d = y - mean_c
        sq_g = jnp.dot((d * d).astype(jnp.bfloat16), reduce_m,
                       preferred_element_type=jnp.float32)       # (TM, G)
        var_g = sq_g * inv_group_size

        inv_g = lax.rsqrt(var_g + EPS)                           # (TM, G) rsqrt (G, not C)
        inv_c = jnp.dot(inv_g.astype(jnp.bfloat16), bcast_m,
                        preferred_element_type=jnp.float32)      # (TM, C)

        out = d * inv_c * gamma + beta
        out_ref[...] = jnp.maximum(out, 0.0).astype(out_ref.dtype)


def _round_up(v, m):
    return ((v + m - 1) // m) * m


def _tpu_vmem_bytes():
    try:
        info = pltpu.get_tpu_info()
        return int(getattr(info, "vmem_capacity_bytes", 64 * 1024 * 1024))
    except Exception:
        return 64 * 1024 * 1024  # conservative (v7x per-TC)


def _plan(N, K, C, x_bytes, out_bytes):
    """Choose (tm, tk, n_tiles, k_tiles, vmem_limit_bytes) for any TPU generation."""
    G = NUM_GROUPS
    vmem_phys = _tpu_vmem_bytes()
    # Explicitly claim the scoped VMEM we plan for (review: ~96 MiB on 128-MiB
    # v5e/v6e parts, ~48 MiB on 64-MiB v7x).
    vmem_limit = (96 * 1024 * 1024 if vmem_phys >= 100 * 1024 * 1024
                  else 48 * 1024 * 1024)
    budget = int(vmem_limit * 0.7)          # headroom for compiler temporaries/spills

    # --- K tiling: keep the double-buffered bf16 weight tile under ~1/3 of budget.
    tk = K
    if 2 * K * C * 2 > budget // 3:
        tk = max(512, (((budget // 3) // (2 * C * 2)) // 512) * 512)
    k_pad = _round_up(K, tk)
    k_tiles = k_pad // tk

    # --- resident buffers (double-buffered by the default BlockSpec pipeline).
    resident = (2 * tk * C * 2              # weight tile (bf16)
                + 2 * (C * G + G * C) * 2   # reduce + broadcast matrices (bf16)
                + 2 * 8 * C * 4)            # packed bias/gamma/beta (f32)

    # --- per-row cost: streamed x/out tiles (x2 buffers), acc scratch, GN temporaries.
    per_row = (2 * tk * x_bytes             # x tile, double-buffered
               + 2 * C * out_bytes          # out tile, double-buffered
               + C * 4                      # f32 accumulator scratch
               + 6 * C * 4)                 # y, d, d*d, mean_c, inv_c, bf16 casts

    avail = budget - resident
    tm_cap = 1024                           # HBM pipeline efficiency saturates ~512-1024
    tm_max = max(8, min(tm_cap, (max(avail, 0) // per_row) // 8 * 8))

    n_round = _round_up(N, 8)
    # >= 4-8 row tiles whenever N allows, so both v7x cores keep >=2 pipelined steps.
    min_tiles = min(8, max(1, n_round // 8))
    n_tiles = max(pl.cdiv(n_round, tm_max), min_tiles)
    tm = _round_up(pl.cdiv(n_round, n_tiles), 8)   # (nearly) divides n_round -> small tail
    n_tiles = pl.cdiv(n_round, tm)
    return tm, tk, n_tiles, k_tiles, vmem_limit


def basic_fc_gn(x, w, b, gamma, beta, *, out_dtype=jnp.float32):
    """x: (N, K) f32 or bf16; w: (K, C) f32; b/gamma/beta: (C,) f32 -> (N, C) out_dtype.

    Passing x in bf16 halves the activation HBM read (the MXU operand is bf16 either
    way); out_dtype=jnp.bfloat16 halves the output stream if the consumer tolerates it.
    """
    N, K = x.shape
    C = w.shape[1]
    G = NUM_GROUPS
    assert C % G == 0, "out_channels must be divisible by 32 (GroupNorm groups)"
    group_size = C // G

    x_bytes = jnp.dtype(x.dtype).itemsize
    out_bytes = jnp.dtype(out_dtype).itemsize
    tm, tk, n_tiles, k_tiles, vmem_limit = _plan(N, K, C, x_bytes, out_bytes)

    n_pad = n_tiles * tm
    k_pad = k_tiles * tk

    x_p = x
    if (n_pad, k_pad) != (N, K):
        x_p = jnp.pad(x, ((0, n_pad - N), (0, k_pad - K)))
    w_bf = w.astype(jnp.bfloat16)
    if k_pad != K:
        w_bf = jnp.pad(w_bf, ((0, k_pad - K), (0, 0)))

    # One-hot group reduce (C,G) / broadcast (G,C) matrices; 0/1 are exact in bf16.
    ch_group = jnp.arange(C) // group_size
    reduce_m = (ch_group[:, None] == jnp.arange(G)[None, :]).astype(jnp.bfloat16)
    bcast_m = (jnp.arange(G)[:, None] == ch_group[None, :]).astype(jnp.bfloat16)

    # Pack the tiny per-channel params into one sublane-aligned (8, C) array.
    params = (jnp.zeros((8, C), jnp.float32)
              .at[0].set(b).at[1].set(gamma).at[2].set(beta))

    kernel = functools.partial(_basic_fc_gn_kernel,
                               inv_group_size=1.0 / group_size)

    flops = 2 * n_pad * k_pad * C + n_pad * 8 * C * G
    bytes_accessed = (n_pad * k_pad * x_bytes + k_pad * C * 2
                      + 2 * C * G * 2 + 8 * C * 4 + n_pad * C * out_bytes)
    cost = pl.CostEstimate(flops=flops, transcendentals=n_pad * G,
                           bytes_accessed=bytes_accessed)

    out = pl.pallas_call(
        kernel,
        out_shape=jax.ShapeDtypeStruct((n_pad, C), out_dtype),
        grid_spec=pltpu.PrefetchScalarGridSpec(
            num_scalar_prefetch=0,
            grid=(n_tiles, k_tiles),
            in_specs=[
                pl.BlockSpec((tm, tk), lambda i, k: (i, k)),   # x tile
                pl.BlockSpec((tk, C), lambda i, k: (k, 0)),    # weight tile (bf16)
                pl.BlockSpec((C, G), lambda i, k: (0, 0)),     # group reduce matrix
                pl.BlockSpec((G, C), lambda i, k: (0, 0)),     # group broadcast matrix
                pl.BlockSpec((8, C), lambda i, k: (0, 0)),     # packed bias/gamma/beta
            ],
            out_specs=pl.BlockSpec((tm, C), lambda i, k: (i, 0)),
            scratch_shapes=[pltpu.VMEM((tm, C), jnp.float32)],
        ),
        compiler_params=pltpu.CompilerParams(
            dimension_semantics=("parallel", "arbitrary"),
            vmem_limit_bytes=int(vmem_limit)),
        cost_estimate=cost,
    )(x_p, w_bf, reduce_m, bcast_m, params)

    return out if n_pad == N else out[:N]


def reference(x, w, b, gamma, beta):
    """Pure-f32 JAX reference mirroring the PyTorch module."""
    y = jnp.dot(x, w, preferred_element_type=jnp.float32) + b
    N, C = y.shape
    G = NUM_GROUPS
    yg = y.reshape(N, G, C // G)
    mean = yg.mean(axis=-1, keepdims=True)
    var = ((yg - mean) ** 2).mean(axis=-1, keepdims=True)
    norm = ((yg - mean) / jnp.sqrt(var + EPS)).reshape(N, C)
    return jnp.maximum(norm * gamma + beta, 0.0)


def reference_kernel_numerics(x, w, b, gamma, beta):
    """JAX emulation of the kernel's exact mixed-precision (bf16 MXU / f32 acc) path."""
    C = w.shape[1]
    G = NUM_GROUPS
    gs = C // G
    ch_group = jnp.arange(C) // gs
    reduce_m = (ch_group[:, None] == jnp.arange(G)[None, :]).astype(jnp.bfloat16)
    bcast_m = (jnp.arange(G)[:, None] == ch_group[None, :]).astype(jnp.bfloat16)
    y = jnp.dot(x.astype(jnp.bfloat16), w.astype(jnp.bfloat16),
                preferred_element_type=jnp.float32) + b
    sum_g = jnp.dot(y.astype(jnp.bfloat16), reduce_m, preferred_element_type=jnp.float32)
    mean_g = sum_g * (1.0 / gs)
    mean_c = jnp.dot(mean_g.astype(jnp.bfloat16), bcast_m,
                     preferred_element_type=jnp.float32)
    d = y - mean_c
    sq_g = jnp.dot((d * d).astype(jnp.bfloat16), reduce_m,
                   preferred_element_type=jnp.float32)
    var_g = sq_g * (1.0 / gs)
    inv_g = lax.rsqrt(var_g + EPS)
    inv_c = jnp.dot(inv_g.astype(jnp.bfloat16), bcast_m,
                    preferred_element_type=jnp.float32)
    return jnp.maximum(d * inv_c * gamma + beta, 0.0)


if __name__ == "__main__":
    # Small shapes consistent with the module: in_channels=64, out_channels=128
    # (out_channels must be a multiple of 32 for GroupNorm(32, ...)); batch=64 so the
    # row-tiled grid actually runs multiple pipelined steps.
    N, K, C = 64, 64, 128

    key = jax.random.PRNGKey(0)
    kx, kw, kb = jax.random.split(key, 3)

    x = jax.random.normal(kx, (N, K), dtype=jnp.float32)

    # Deterministic parameter init (synthetic, PyTorch-like uniform fan-in scale).
    bound = 1.0 / float(K) ** 0.5
    w = jax.random.uniform(kw, (K, C), minval=-bound, maxval=bound, dtype=jnp.float32)
    b = jax.random.uniform(kb, (C,), minval=-bound, maxval=bound, dtype=jnp.float32)
    gamma = jnp.ones((C,), dtype=jnp.float32)   # GroupNorm default weight
    beta = jnp.zeros((C,), dtype=jnp.float32)   # GroupNorm default bias

    out = jax.block_until_ready(basic_fc_gn(x, w, b, gamma, beta))
    assert out.shape == (N, C)
    assert out.dtype == jnp.float32

    # Tight check: the kernel matches a JAX emulation of the identical bf16/f32 path.
    ref_mixed = reference_kernel_numerics(x, w, b, gamma, beta)
    assert jnp.allclose(out, ref_mixed, atol=1e-2, rtol=1e-2), \
        "mismatch vs mixed-precision (bf16 MXU) reference"

    # Loose drift check vs the full-f32 module reference (bf16 rounding amplified in
    # GroupNorm groups whose variance is tiny relative to eps, so use an aggregate).
    ref_f32 = reference(x, w, b, gamma, beta)
    assert float(jnp.mean(jnp.abs(out - ref_f32))) < 2.5e-2, \
        "mean drift vs f32 reference too large"

    print("KERNEL_OK")
</pallas_src>

<mosaic_0001>
module attributes {stable_mosaic.version = 11 : i64} {
  func.func @_basic_fc_gn_kernel(%arg0: i32, %arg1: i32, %arg2: memref<8x64xf32, #tpu.memory_space<vmem>>, %arg3: memref<64x128xbf16, #tpu.memory_space<vmem>>, %arg4: memref<128x32xbf16, #tpu.memory_space<vmem>>, %arg5: memref<32x128xbf16, #tpu.memory_space<vmem>>, %arg6: memref<8x128xf32, #tpu.memory_space<vmem>>, %arg7: memref<8x128xf32, #tpu.memory_space<vmem>>, %arg8: memref<8x128xf32, #tpu.memory_space<vmem>>) attributes {dimension_semantics = [#tpu.dimension_semantics<parallel>, #tpu.dimension_semantics<arbitrary>], iteration_bounds = array<i64: 8, 1>, scalar_prefetch = 0 : i64, scratch_operands = 1 : i64, tpu.core_type = #tpu.core_type<tc>, window_params = [{transform_indices = @transform_0, window_bounds = array<i64: 8, 64>}, {transform_indices = @transform_1, window_bounds = array<i64: 64, 128>}, {pipeline_mode = #tpu.pipeline_mode<synchronous>, transform_indices = @transform_2, window_bounds = array<i64: 128, 32>}, {pipeline_mode = #tpu.pipeline_mode<synchronous>, transform_indices = @transform_3, window_bounds = array<i64: 32, 128>}, {pipeline_mode = #tpu.pipeline_mode<synchronous>, transform_indices = @transform_4, window_bounds = array<i64: 8, 128>}, {transform_indices = @transform_5, window_bounds = array<i64: 8, 128>}]} {
    %c0_i32 = arith.constant 0 : i32
    %0 = arith.cmpi eq, %arg1, %c0_i32 : i32
    %1 = arith.extui %0 : i1 to i32
    %c0_i32_0 = arith.constant 0 : i32
    %2 = arith.cmpi ne, %1, %c0_i32_0 : i32
    scf.if %2 {
      %cst_10 = arith.constant 0.000000e+00 : f32
      %13 = vector.broadcast %cst_10 : f32 to vector<8x128xf32>
      %c0_11 = arith.constant 0 : index
      %c0_12 = arith.constant 0 : index
      %14 = vector.load %arg8[%c0_11, %c0_12] : memref<8x128xf32, #tpu.memory_space<vmem>>, vector<8x128xf32>
      tpu.vector_store %arg8[%c0_11, %c0_12], %13 {strides = array<i32>} : memref<8x128xf32, #tpu.memory_space<vmem>>, vector<8x128xf32>,
    } else {
    }
    %c0 = arith.constant 0 : index
    %c0_1 = arith.constant 0 : index
    %3 = vector.load %arg2[%c0, %c0_1] : memref<8x64xf32, #tpu.memory_space<vmem>>, vector<8x64xf32>
    %4 = arith.truncf %3 : vector<8x64xf32> to vector<8x64xbf16>
    %c0_2 = arith.constant 0 : index
    %c0_3 = arith.constant 0 : index
    %5 = vector.load %arg8[%c0_2, %c0_3] : memref<8x128xf32, #tpu.memory_space<vmem>>, vector<8x128xf32>
    %c0_4 = arith.constant 0 : index
    %c0_5 = arith.constant 0 : index
    %6 = vector.load %arg3[%c0_4, %c0_5] : memref<64x128xbf16, #tpu.memory_space<vmem>>, vector<64x128xbf16>
    %cst = arith.constant dense<0.000000e+00> : vector<8x128xf32>
    %7 = tpu.matmul %4, %6, %cst {dimension_numbers = #tpu.dot_dimension_numbers<[1], [0], [0], [1], [0, 0, 1, 1], [], []>} : vector<8x64xbf16>, vector<64x128xbf16>, vector<8x128xf32> -> vector<8x128xf32>
    %8 = arith.addf %5, %7 : vector<8x128xf32>
    %c0_6 = arith.constant 0 : index
    %c0_7 = arith.constant 0 : index
    %9 = vector.load %arg8[%c0_6, %c0_7] : memref<8x128xf32, #tpu.memory_space<vmem>>, vector<8x128xf32>
    tpu.vector_store %arg8[%c0_6, %c0_7], %8 {strides = array<i32>} : memref<8x128xf32, #tpu.memory_space<vmem>>, vector<8x128xf32>,
    %c0_i32_8 = arith.constant 0 : i32
    %10 = arith.cmpi eq, %arg1, %c0_i32_8 : i32
    %11 = arith.extui %10 : i1 to i32
    %c0_i32_9 = arith.constant 0 : i32
    %12 = arith.cmpi ne, %11, %c0_i32_9 : i32
    scf.if %12 {
      %c0_10 = arith.constant 0 : index
      %c0_11 = arith.constant 0 : index
      %13 = vector.load %arg6[%c0_10, %c0_11] : memref<8x128xf32, #tpu.memory_space<vmem>>, vector<8x128xf32>
      %14 = vector.extract_strided_slice %13 {offsets = [0, 0], sizes = [1, 128], strides = [1, 1]} : vector<8x128xf32> to vector<1x128xf32>
      %15 = vector.extract_strided_slice %13 {offsets = [1, 0], sizes = [1, 128], strides = [1, 1]} : vector<8x128xf32> to vector<1x128xf32>
      %16 = vector.extract_strided_slice %13 {offsets = [2, 0], sizes = [1, 128], strides = [1, 1]} : vector<8x128xf32> to vector<1x128xf32>
      %c0_12 = arith.constant 0 : index
      %c0_13 = arith.constant 0 : index
      %17 = vector.load %arg8[%c0_12, %c0_13] : memref<8x128xf32, #tpu.memory_space<vmem>>, vector<8x128xf32>
      %18 = vector.broadcast %14 : vector<1x128xf32> to vector<8x128xf32>
      %19 = arith.addf %17, %18 : vector<8x128xf32>
      %c0_14 = arith.constant 0 : index
      %c0_15 = arith.constant 0 : index
      %20 = vector.load %arg4[%c0_14, %c0_15] : memref<128x32xbf16, #tpu.memory_space<vmem>>, vector<128x32xbf16>
      %c0_16 = arith.constant 0 : index
      %c0_17 = arith.constant 0 : index
      %21 = vector.load %arg5[%c0_16, %c0_17] : memref<32x128xbf16, #tpu.memory_space<vmem>>, vector<32x128xbf16>
      %22 = arith.truncf %19 : vector<8x128xf32> to vector<8x128xbf16>
      %cst_18 = arith.constant dense<0.000000e+00> : vector<8x32xf32>
      %23 = tpu.matmul %22, %20, %cst_18 {dimension_numbers = #tpu.dot_dimension_numbers<[1], [0], [0], [1], [0, 0, 1, 1], [], []>} : vector<8x128xbf16>, vector<128x32xbf16>, vector<8x32xf32> -> vector<8x32xf32>
      %cst_19 = arith.constant 2.500000e-01 : f32
      %24 = vector.broadcast %cst_19 : f32 to vector<8x32xf32>
      %25 = arith.mulf %23, %24 : vector<8x32xf32>
      %26 = arith.truncf %25 : vector<8x32xf32> to vector<8x32xbf16>
      %cst_20 = arith.constant dense<0.000000e+00> : vector<8x128xf32>
      %27 = tpu.matmul %26, %21, %cst_20 {dimension_numbers = #tpu.dot_dimension_numbers<[1], [0], [0], [1], [0, 0, 1, 1], [], []>} : vector<8x32xbf16>, vector<32x128xbf16>, vector<8x128xf32> -> vector<8x128xf32>
      %28 = arith.subf %19, %27 : vector<8x128xf32>
      %29 = arith.mulf %28, %28 : vector<8x128xf32>
      %30 = arith.truncf %29 : vector<8x128xf32> to vector<8x128xbf16>
      %cst_21 = arith.constant dense<0.000000e+00> : vector<8x32xf32>
      %31 = tpu.matmul %30, %20, %cst_21 {dimension_numbers = #tpu.dot_dimension_numbers<[1], [0], [0], [1], [0, 0, 1, 1], [], []>} : vector<8x128xbf16>, vector<128x32xbf16>, vector<8x32xf32> -> vector<8x32xf32>
      %cst_22 = arith.constant 2.500000e-01 : f32
      %32 = vector.broadcast %cst_22 : f32 to vector<8x32xf32>
      %33 = arith.mulf %31, %32 : vector<8x32xf32>
      %cst_23 = arith.constant 1.000000e-03 : f32
      %34 = vector.broadcast %cst_23 : f32 to vector<8x32xf32>
      %35 = arith.addf %33, %34 : vector<8x32xf32>
      %36 = math.rsqrt %35 : vector<8x32xf32>
      %37 = arith.truncf %36 : vector<8x32xf32> to vector<8x32xbf16>
      %cst_24 = arith.constant dense<0.000000e+00> : vector<8x128xf32>
      %38 = tpu.matmul %37, %21, %cst_24 {dimension_numbers = #tpu.dot_dimension_numbers<[1], [0], [0], [1], [0, 0, 1, 1], [], []>} : vector<8x32xbf16>, vector<32x128xbf16>, vector<8x128xf32> -> vector<8x128xf32>
      %39 = arith.mulf %28, %38 : vector<8x128xf32>
      %40 = vector.broadcast %15 : vector<1x128xf32> to vector<8x128xf32>
      %41 = arith.mulf %39, %40 : vector<8x128xf32>
      %42 = vector.broadcast %16 : vector<1x128xf32> to vector<8x128xf32>
      %43 = arith.addf %41, %42 : vector<8x128xf32>
      %cst_25 = arith.constant 0.000000e+00 : f32
      %44 = vector.broadcast %cst_25 : f32 to vector<8x128xf32>
      %45 = arith.maximumf %43, %44 : vector<8x128xf32>
      %c0_26 = arith.constant 0 : index
      %c0_27 = arith.constant 0 : index
      %46 = vector.load %arg7[%c0_26, %c0_27] : memref<8x128xf32, #tpu.memory_space<vmem>>, vector<8x128xf32>
      tpu.vector_store %arg7[%c0_26, %c0_27], %45 {strides = array<i32>} : memref<8x128xf32, #tpu.memory_space<vmem>>, vector<8x128xf32>,
    } else {
    }
    return
  }
  func.func @transform_0(%arg0: i32, %arg1: i32) -> (i32, i32) {
    %c0_i32 = arith.constant 0 : i32
    return %arg0, %arg1 : i32, i32
  }
  func.func @transform_1(%arg0: i32, %arg1: i32) -> (i32, i32) {
    %c0_i32 = arith.constant 0 : i32
    %c0_i32_0 = arith.constant 0 : i32
    return %arg1, %c0_i32 : i32, i32
  }
  func.func @transform_2(%arg0: i32, %arg1: i32) -> (i32, i32) {
    %c0_i32 = arith.constant 0 : i32
    %c0_i32_0 = arith.constant 0 : i32
    %c0_i32_1 = arith.constant 0 : i32
    return %c0_i32, %c0_i32_0 : i32, i32
  }
  func.func @transform_3(%arg0: i32, %arg1: i32) -> (i32, i32) {
    %c0_i32 = arith.constant 0 : i32
    %c0_i32_0 = arith.constant 0 : i32
    %c0_i32_1 = arith.constant 0 : i32
    return %c0_i32, %c0_i32_0 : i32, i32
  }
  func.func @transform_4(%arg0: i32, %arg1: i32) -> (i32, i32) {
    %c0_i32 = arith.constant 0 : i32
    %c0_i32_0 = arith.constant 0 : i32
    %c0_i32_1 = arith.constant 0 : i32
    return %c0_i32, %c0_i32_0 : i32, i32
  }
  func.func @transform_5(%arg0: i32, %arg1: i32) -> (i32, i32) {
    %c0_i32 = arith.constant 0 : i32
    %c0_i32_0 = arith.constant 0 : i32
    return %arg0, %c0_i32 : i32, i32
  }
}

</mosaic_0001>

<bundles_post_ra>
// kernel: tpu_custom_call.1
= control target key start
LH: loop header
LB: loop body
LE: loop exit
PB: predicated region body
PF: predicated region fallthrough
CT: control target
= control target key end

     0   :  { %10 = vsyncpa [#allocation4], 0  ;;  %s1312_s0 = inlined_call_operand.vmem [shape: f32[64,64], index: 0, kind: input, shape index: {}]   ;;  %s1313_s1 = inlined_call_operand.hbm [shape: bf16[64,128], index: 1, kind: input, shape index: {}]   ;;  %s1314_s2 = inlined_call_operand.vmem [shape: bf16[128,32], index: 2, kind: input, shape index: {}]   ;;  %s1315_s3 = inlined_call_operand.vmem [shape: bf16[32,128], index: 3, kind: input, shape index: {}]   ;;  %s1316_s4 = inlined_call_operand.vmem [shape: f32[8,128], index: 4, kind: input, shape index: {}]   ;;  %s1317_s5 = inlined_call_operand.hbm [shape: f32[64,128], index: 5, kind: output, shape index: {}]  }
   0x1   :  { %11 = vsyncpa [#allocation5], 0 }
   0x2   :  { %13 = vsyncpa [#allocation5 + $0x1], 0  ;;  %s1093_s18 = smov 0   ;;  %s1095_s19 = smov 0  }
   0x3   :  { %s1097_s20 = smov 0   ;;  %s1099_s21 = smov 0  }
   0x4   :  { %s1101_s22 = smov 0   ;;  %s1103_s23 = smov 0  }
   0x5 LB: > { %s732_s24 = sadd.s32 4294967295, %s1055_s23   ;;  %s733_s25 = sadd.s32 4294967294, %s1055_s23   ;;  %s1055_s23 = sphi %s1103_s23, %s19_s23   ;;  %s1051_s22 = sphi %s1101_s22, %s1335_s22   ;;  %s1047_s21 = sphi %s1099_s21, %s1334_s21   ;;  %s1043_s20 = sphi %s1097_s20, %s1333_s20   ;;  %s1039_s19 = sphi %s1095_s19, %s1332_s19   ;;  %s1035_s18 = sphi %s1093_s18, %s1331_s18  }
   0x6   : > { %s31_s26 = sadd.s32 1, %s1051_s22  ;;  %s155_s27 = sadd.s32 1, %s1043_s20 }
   0x7   : > { %p33_p0 = scmp.ge.s32.totalorder %s31_s26, 8  ;;  %p165_p1 = scmp.ne.s32.totalorder %s1043_s20, %s1039_s19 }
   0x8   : > { %p166_p2 = scmp.eq.s32.totalorder %s732_s24, 7  ;;  %p171_p3 = scmp.ne.s32.totalorder %s1039_s19, %s1035_s18 }
   0x9   : > { %s1337_s26 = smov (%p33_p0, %s31_s26), 0  ;;  %p172_p5 = scmp.eq.s32.totalorder %s733_s25, 7 }
   0xa   : > { %p1133_p4 = por %p166_p2, %p165_p1  ;;  %s152_s29 = ssub.s32 %s1051_s22, %s1337_s26 }
   0xb   : > { %p734_p6 = scmp.ge.s32.totalorder %s1055_s23, 1  ;;  %p153_p7 = scmp.eq.s32.totalorder %s152_s29, 0 }
   0xc   : > { %s1322_s28 = scalar_select %p1133_p4, 1, 0 }
   0xd   : > { %p1140_p8 = por %p172_p5, %p171_p3  ;;  %p179_p9 = scmp.lt.s32.totalorder %s1055_s23, 9 }
   0xe   : > { %s1146_s6 = scalar_select %p153_p7, %s1043_s20, %s155_s27  }
   0xf   : > { %s1323_s30 = scalar_select %p1140_p8, 1, 0 }
  0x10   : > { %p1148_p10 = pnand %p734_p6, %p179_p9  ;;  %p1152_p11 = scmp.eq.s32.totalorder %s732_s24, 0 }
  0x11   : > { %s1057_s9 = smov [#allocation3]   ;;  %s945_s14 = scalar_lea.hbm %s1313_s1, 512 }
  0x12   : > { %s1324_s7 = scalar_select %p1148_p10, 1, 0 }
  0x13   : > { %s1325_s8 = scalar_select %p1152_p11, 1, 0 }
  0x14   : > { %p865_p12 = pneg %p1148_p10  ;;  %s194_s10 = sshll.u32 %s1057_s9, 4  ;;  %s195_s10 = int_to_ptr.vmem [resolvable:$true] %s194_s10 }
  0x15   : > { %p946_p0 = scmp.ne.s32.totalorder %s1313_s1, %s945_s14  ;;  %p952_p5 = scmp.lt.u32.totalorder %s945_s14, %s1313_s1 }
  0x16   : > { %p1160_p13 = pnand %p1152_p11, %p865_p12 }
  0x18   : > { %p947_p1 = pneg %p1160_p13 }
  0x1a   : > { %p948_p2 = pnand %p947_p1, %p946_p0 }
  0x1c   : > { %p949_p3 = pneg %p948_p2 }
  0x1e   : > { %p954_p6 = pnand %p952_p5, %p949_p3 }
  0x20   : > { %957 = shalt.err (!%p954_p6)
}
  0x21   : > { %s958_s25 = scalar_lea.vmem %s195_s10, 512  ;;  %p966_p8 = scmp.lt.s32.totalorder %s195_s10, %s195_s10 }
  0x22   : > { %p959_p7 = scmp.ne.s32.totalorder %s195_s10, %s958_s25  ;;  %p967_p4 = scmp.lt.s32.totalorder %s958_s25, %s958_s25 }
  0x24   : > { %p961_p9 = pnand %p959_p7, %p947_p1  ;;  %p968_p11 = por %p967_p4, %p966_p8 }
  0x26   : > { %p962_p12 = pneg %p961_p9 }
  0x28   : > { %p969_p10 = pnand %p968_p11, %p962_p12 }
  0x2a   : > { %972 = shalt.err (!%p969_p10)
}
  0x2b   : > { %s1058_s27 = smov 64   ;;  %s1059_s29 = smov 4  }
  0x2c   : > { %868 = dma.hbm_to_vmem [thread:$0]  (!%p1160_p13), %s1313_s1, 512, %s195_s10, [#allocation4], %s1058_s27, %s1058_s27, %s1059_s29  }
  0x2d   : > { %p1327_p0 = scmp.ne.s32.totalorder %s1324_s7, 0 }
  0x2e   : > { %p1328_p2 = scmp.ne.s32.totalorder (!%p1327_p0), %s1325_s8, 0 }
  0x2f   : > { %229 = sbr.rel (%p1327_p0) target bundleno = 1186 (0x4a2), region = 40 }
  0x36   : > { %1026 = dma.done.wait (%p1328_p2), [#allocation4], 512  }
  0x37   : > { %1028 = vsyncadd (%p1328_p2), [#allocation4], 4294966784  ;;  %v1060_v0 = vmov 0.0   ;;  %vm1061_vm0 = vmmov 0   ;;  %p259_p4 = scmp.lt.s32.totalorder %s1047_s21, 7  ;;  %v929_v1 = vld [vmem:[#allocation3] sm:$0xff]   ;;  %v359_v15 = vlaneseq }
  0x38   : > { %791 = vmatprep.subr.bf16.mxu0 %v1060_v0  ;;  %799 = vmatprep.mubr.msk.bf16.mxu0 %vm1061_vm0, %v1060_v0  ;;  %v930_v2 = vld [vmem:[#allocation3 + $0x8] sm:$0xff]   ;;  %v933_v3 = vld [vmem:[%s1314_s2] sm:$0xff]   ;;  %v931_v4 = vld [vmem:[#allocation3 + $0x10] sm:$0xff]   ;;  %vm308_vm1 = vcmask 523264   ;;  %vm487_vm2 = vcmask 261120   ;;  %s256_s29 = sand.u32 1, %s1039_s19  }
  0x39   : > { %803 = vmatprep.subr.bf16.mxu1 %v1060_v0  ;;  %819 = vmatprep.mubr.msk.bf16.mxu1 %vm1061_vm0, %v1060_v0  ;;  %s260_s7 = scalar_select %p259_p4, %s1047_s21, 7  ;;  %v934_v5 = vld [vmem:[%s1314_s2 + $0x8] sm:$0xff]   ;;  %v932_v6 = vld [vmem:[#allocation3 + $0x18] sm:$0xff]   ;;  %v935_v8 = vld [vmem:[%s1314_s2 + $0x10] sm:$0xff]   ;;  %v360_v16 = vshrl.u32 %v359_v15, 7 }
  0x3a   : > { %792 = vmatpush3.bf16.msra.mxu0 %v929_v1  ;;  %804 = vmatpush3.bf16.msra.mxu1 %v933_v3  ;;  %v936_v10 = vld [vmem:[%s1314_s2 + $0x18] sm:$0xff]   ;;  %v937_v11 = vld [vmem:[%s1314_s2 + $0x20] sm:$0xff]   ;;  %v938_v12 = vld [vmem:[%s1314_s2 + $0x28] sm:$0xff]   ;;  %s739_s9 = sshll.u32 %s256_s29, 3  ;;  %s759_s12 = sshll.u32 %s1047_s21, 7 }
  0x3b   : > { %793 = vmatprep.subr.bf16.mxu0 %v1060_v0  ;;  %s740_s8 = sshll.u32 %s260_s7, 3  ;;  %805 = vmatprep.subr.bf16.mxu1 %v1060_v0  ;;  %v939_v13 = vld [vmem:[%s1314_s2 + $0x30] sm:$0xff]   ;;  %v940_v14 = vld [vmem:[%s1314_s2 + $0x38] sm:$0xff]   ;;  %v361_v17 = vsub.s32 0, %v360_v16  ;;  %v357_v18 = vld [vmem:[%s1316_s4] sm:$0xff]  ;;  %v624_v49 = vsub.s32 1, %v360_v16  ;;  %s1265_s13 = scalar_lea.hbm %s1317_s5, %s759_s12 }
  0x3c   : > { %s265_s15 = scalar_lea.vmem %s1312_s0, %s740_s8  ;;  %v941_v24 = vld [vmem:[%s1315_s3] sm:$0xff]   ;;  %v942_v27 = vld [vmem:[%s1315_s3 + $0x8] sm:$0xff]   ;;  %v629_v50 = vsub.s32 2, %v360_v16  ;;  %s258_s7 = scalar_lea.vmem [#allocation6], %s739_s9 }
  0x3d   : > { %v273_v7 = vld [vmem:[%s265_s15] sm:$0xff]  ;;  %v362_v19 = vrot.slane %v357_v18, %v361_v17  ;;  %v625_v51 = vrot.slane %v357_v18, %v624_v49  ;;  %s648_s8 = sshll.u32 %s258_s7, 4  ;;  %s635_s14 = scalar_lea.sflag [#allocation5], %s256_s29  ;;  %s1267_s8 = int_to_ptr.vmem [resolvable:$true] %s648_s8 }
  0x3e   : > { %794 = vmatpush3.bf16.msra.mxu0 %v930_v2  ;;  %806 = vmatpush3.bf16.msra.mxu1 %v934_v5  ;;  %v274_v9 = vpack.c.bf16 %v273_v7, %v273_v7  ;;  %v630_v54 = vrot.slane %v357_v18, %v629_v50  ;;  %s973_s15 = scalar_lea.vmem %s1267_s8, 128  ;;  %p1329_p10 = scmp.ne.s32.totalorder %s1322_s28, 0 }
  0x3f   : > { %795 = vmatprep.subr.bf16.mxu0 %v1060_v0  ;;  %807 = vmatprep.subr.bf16.mxu1 %v1060_v0  ;;  %p974_p8 = scmp.ne.s32.totalorder %s1267_s8, %s973_s15  ;;  %s1062_s21 = smov [#allocation6]  }
  0x40   : > { %s977_s16 = sshll.u32 %s1062_s21, 4  ;;  %s978_s16 = int_to_ptr.vmem [resolvable:$false] %s977_s16 }
  0x41   : > { %p975_p11 = pnand %p974_p8, %p1329_p10  ;;  %s979_s17 = scalar_lea.vmem %s978_s16, 256 }
  0x42   : > { %796 = vmatpush3.bf16.msra.mxu0 %v931_v4  ;;  %808 = vmatpush3.bf16.msra.mxu1 %v935_v8  ;;  %p980_p1 = scmp.lt.s32.totalorder %s1267_s8, %s978_s16  ;;  %p981_p3 = scmp.lt.s32.totalorder %s979_s17, %s973_s15 }
  0x43   : > { %797 = vmatprep.subr.bf16.mxu0 %v1060_v0  ;;  %809 = vmatprep.subr.bf16.mxu1 %v1060_v0  ;;  %p976_p13 = pneg %p975_p11 }
  0x44   : > { %p982_p5 = por %p981_p3, %p980_p1 }
  0x46   : > { %798 = vmatpush3.bf16.msra.mxu0 %v932_v6  ;;  %810 = vmatpush3.bf16.msra.mxu1 %v936_v10  ;;  %p983_p6 = pnand %p982_p5, %p976_p13 }
  0x47   : > { %831 = vmatprep.subr.bf16.mxu0 %v1060_v0  ;;  %811 = vmatprep.subr.bf16.mxu1 %v1060_v0 }
  0x49   : > { %800 = vmatmul.mubr.msk.bf16.vlgmr.msra.gmra.mrb[0].mxu0 %vm308_vm1, %v274_v9 }
  0x4a   : > { %832 = vmatpush3.bf16.msra.mxu0 %v933_v3  ;;  %847 = vmatprep.mubr.msk.bf16.mxu0 %vm1061_vm0, %v1060_v0 }
  0x4b   : > { %833 = vmatprep.subr.bf16.mxu0 %v1060_v0  ;;  %812 = vmatpush3.bf16.msra.mxu1 %v937_v11 }
  0x4c   : > { %813 = vmatprep.subr.bf16.mxu1 %v1060_v0 }
  0x4e   : > { %834 = vmatpush3.bf16.msra.mxu0 %v934_v5 }
  0x4f   : > { %835 = vmatprep.subr.bf16.mxu0 %v1060_v0  ;;  %814 = vmatpush3.bf16.msra.mxu1 %v938_v12 }
  0x50   : > { %815 = vmatprep.subr.bf16.mxu1 %v1060_v0 }
  0x52   : > { %836 = vmatpush3.bf16.msra.mxu0 %v935_v8 }
  0x53   : > { %837 = vmatprep.subr.bf16.mxu0 %v1060_v0  ;;  %816 = vmatpush3.bf16.msra.mxu1 %v939_v13 }
  0x54   : > { %817 = vmatprep.subr.bf16.mxu1 %v1060_v0 }
  0x56   : > { %838 = vmatpush3.bf16.msra.mxu0 %v936_v10 }
  0x57   : > { %839 = vmatprep.subr.bf16.mxu0 %v1060_v0  ;;  %818 = vmatpush3.bf16.msra.mxu1 %v940_v14 }
  0x58   : > { %823 = vmatprep.subr.bf16.mxu1 %v1060_v0 }
  0x5a   : > { %840 = vmatpush3.bf16.msra.mxu0 %v937_v11 }
  0x5b   : > { %841 = vmatprep.subr.bf16.mxu0 %v1060_v0 }
  0x5e   : > { %842 = vmatpush3.bf16.msra.mxu0 %v938_v12 }
  0x5f   : > { %843 = vmatprep.subr.bf16.mxu0 %v1060_v0 }
  0x62   : > { %844 = vmatpush3.bf16.msra.mxu0 %v939_v13 }
  0x63   : > { %845 = vmatprep.subr.bf16.mxu0 %v1060_v0 }
  0x66   : > { %846 = vmatpush3.bf16.msra.mxu0 %v940_v14 }
 0x11c   : > { %v346_v20 = vpop.f32.mrb[0].mxu0 }
 0x11d   : > { %v363_v21 = vadd.f32 %v362_v19, %v346_v20  ;;  %v801_v22 = vpop.f32.mrb[1].mxu0 }
 0x11e   : > { %v349_v23 = vpop.f32.mrb[2].mxu0 }
 0x11f   : > { %v384_v25 = vpack.c.bf16 %v363_v21, %v363_v21  ;;  %v802_v26 = vpop.f32.mrb[3].mxu0 }
 0x121   : > { %820 = vmatmul.mubr.bf16.vlgmr.msra.gmra.mrb[0].mxu1 %v384_v25 }
 0x122   : > { %824 = vmatpush3.bf16.msra.mxu1 %v941_v24  ;;  %827 = vmatprep.mubr.msk.bf16.mxu1 %vm1061_vm0, %v1060_v0 }
 0x123   : > { %825 = vmatprep.subr.bf16.mxu1 %v1060_v0 }
 0x126   : > { %826 = vmatpush3.bf16.msra.mxu1 %v942_v27 }
 0x127   : > { %851 = vmatprep.subr.bf16.mxu1 %v1060_v0 }
 0x1f4   : > { %v467_v28 = vpop.f32.mrb[0].mxu1 }
 0x1f5   : > { %v473_v29 = vmul.f32 0.25, %v467_v28  ;;  %v821_v30 = vpop.f32.mrb[1].mxu1 }
 0x1f6   : > { %v470_v31 = vpop.f32.mrb[2].mxu1 }
 0x1f7   : > { %v474_v32 = vpack.c.bf16 %v473_v29, %v473_v29  ;;  %v822_v33 = vpop.f32.mrb[3].mxu1 }
 0x1f9   : > { %828 = vmatmul.mubr.msk.bf16.vlgmr.msra.gmra.mrb[4].mxu1 %vm487_vm2, %v474_v32 }
 0x1fa   : > { %852 = vmatpush3.bf16.msra.mxu1 %v941_v24  ;;  %855 = vmatprep.mubr.msk.bf16.mxu1 %vm1061_vm0, %v1060_v0 }
 0x1fb   : > { %853 = vmatprep.subr.bf16.mxu1 %v1060_v0 }
 0x1fe   : > { %854 = vmatpush3.bf16.msra.mxu1 %v942_v27 }
 0x2cc   : > { %v525_v34 = vpop.f32.mrb[4].mxu1 }
 0x2cd   : > { %v531_v35 = vsub.f32 %v363_v21, %v525_v34  ;;  %v829_v36 = vpop.f32.mrb[5].mxu1 }
 0x2ce   : > { %v528_v37 = vpop.f32.mrb[6].mxu1 }
 0x2cf   : > { %v532_v38 = vmul.f32 %v531_v35, %v531_v35  ;;  %v830_v39 = vpop.f32.mrb[7].mxu1 }
 0x2d1   : > { %v533_v40 = vpack.c.bf16 %v532_v38, %v532_v38 }
 0x2d3   : > { %848 = vmatmul.mubr.bf16.vlgmr.msra.gmra.mrb[4].mxu0 %v533_v40 }
 0x3a6   : > { %v568_v41 = vpop.f32.mrb[4].mxu0 }
 0x3a7   : > { %v574_v42 = vmul.f32 0.25, %v568_v41  ;;  %v849_v43 = vpop.f32.mrb[5].mxu0 }
 0x3a8   : > { %v571_v44 = vpop.f32.mrb[6].mxu0 }
 0x3a9   : > { %v575_v45 = vadd.f32 0.001, %v574_v42  ;;  %v850_v46 = vpop.f32.mrb[7].mxu0 }
 0x3ab   : > { %943 = vrsqrt.f32 %v575_v45 }
 0x3b5   : > { %v944_v47 = vpop.eup %943 }
 0x3b6   : > { %v577_v48 = vpack.c.bf16 %v944_v47, %v944_v47 }
 0x3b8   : > { %856 = vmatmul.mubr.msk.bf16.vlgmr.msra.gmra.mrb[8].mxu1 %vm487_vm2, %v577_v48 }
 0x48b   : > { %v615_v52 = vpop.f32.mrb[8].mxu1 }
 0x48c   : > { %v621_v53 = vmul.f32 %v615_v52, %v531_v35  ;;  %v857_v55 = vpop.f32.mrb[9].mxu1 }
 0x48d   : > { %v618_v56 = vpop.f32.mrb[10].mxu1 }
 0x48e   : > { %v626_v57 = vmul.f32 %v625_v51, %v621_v53  ;;  %v858_v58 = vpop.f32.mrb[11].mxu1 }
 0x490   : > { %v631_v59 = vadd.f32 %v630_v54, %v626_v57 }
 0x492   : > { %v632_v60 = vmax.f32 %v631_v59, 0.0 }
 0x494   : > { %633 = vst [vmem:[%s258_s7] sm:$0xff] %v632_v60 }
 0x495   : > { %986 = shalt.err (!%p983_p6)
}
 0x496   : > { %s987_s24 = scalar_lea.hbm %s1265_s13, 128  ;;  %s991_s29 = scalar_lea.hbm %s1317_s5, 1024 }
 0x497   : > { %p988_p7 = scmp.ne.s32.totalorder %s1265_s13, %s987_s24  ;;  %p992_p0 = scmp.lt.u32.totalorder %s1265_s13, %s1317_s5 }
 0x498   : > { %p993_p2 = scmp.lt.u32.totalorder %s991_s29, %s987_s24  ;;  %p995_p8 = scmp.lt.u32.totalorder %s987_s24, %s1265_s13 }
 0x499   : > { %p989_p9 = pnand %p988_p7, %p1329_p10 }
 0x49a   : > { %p994_p4 = por %p993_p2, %p992_p0 }
 0x49b   : > { %p990_p12 = pneg %p989_p9 }
 0x49c   : > { %p996_p11 = por %p995_p8, %p994_p4 }
 0x49e   : > { %p997_p13 = pnand %p996_p11, %p990_p12 }
 0x4a0   : > { %1000 = shalt.err (!%p997_p13)
}
 0x4a1   : > { %863 = dma.vmem_to_hbm [thread:$0]  (%p1329_p10), %s1267_s8, 128, %s1265_s13, %s635_s14  }
 0x4a2 PF: > { %p875_p1 = scmp.ge.s32.totalorder %s1055_s23, 2  ;;  %s660_s7 = sand.u32 1, %s1035_s18  }
 0x4a3   : > { %p1330_p3 = scmp.ne.s32.totalorder %s1323_s30, 0  ;;  %s661_s10 = scalar_lea.sflag [#allocation5], %s660_s7 }
 0x4a5   : > { %p870_p5 = pnand %p875_p1, %p1330_p3 }
 0x4a7   : > { %1030 = dma.done.wait (!%p870_p5), %s661_s10, 128  }
 0x4a8   : > { %1032 = vsyncadd (!%p870_p5), %s661_s10, 4294967168  ;;  %s19_s23 = sadd.s32 1, %s1055_s23   ;;  %s1331_s18 = smov %s1039_s19 }
 0x4a9   : > { %p16_p6 = scmp.ge.s32.totalorder %s19_s23, 10   ;;  %s1332_s19 = smov %s1043_s20 }
 0x4aa   : > { %s1333_s20 = smov %s1146_s6  ;;  %s1334_s21 = smov %s1051_s22 }
 0x4ab   : > { %s1335_s22 = smov %s1337_s26  ;;  %18 = sbr.rel (!%p16_p6) target bundleno = 5 (0x5), region = 89 }
 0x4b2   :  { %666 = vsyncpa [#allocation4], 1 }
 0x4b3   :  { %668 = vsyncpa [#allocation4 + $0x1], 1 }
 0x4b4   :  { %669 = vsyncpa [#allocation5], 1 }
 0x4b5   :  { %671 = vsyncpa [#allocation5 + $0x1], 1 }

</bundles_post_ra>
